<compile_context>
chip_gen: v5e
topology: v5e:2x2
jax: 0.10.0
libtpu: 0.0.40
codegen_flags: <defaults>
</compile_context>

<pallas_src>
import functools

import numpy as np
import jax
import jax.numpy as jnp
from jax import lax
from jax.experimental import pallas as pl
from jax.experimental.pallas import tpu as pltpu

EPS = 1e-5

# Tile policy (safe across v5e / v6e / v7x):
_BLOCK_ELEMS = 2 * 1024 * 1024          # ~8 MiB of f32 per streaming block
_MAX_LANE_TILE = 8192                   # lanes per block (multiple of 128)
_VMEM_LIMIT_BYTES = 48 * 1024 * 1024    # < v7x 64 MiB physical VMEM


def _pick_tile(total, unit, cap):
    """Largest divisor of `total` that is a multiple of `unit` and <= cap.

    Preference order:
      1. full dimension if it already fits the cap (always a legal block shape)
      2. largest unit-multiple divisor <= cap (legal, lane/sublane aligned)
      3. full dimension if it is at most 2x the cap (legal; modest overshoot)
      4. largest divisor <= cap (correct; may lower to masked vector ops)
    Never returns an arbitrarily oversized block (the old full-dim fallback).
    """
    if total <= cap:
        return total
    best_aligned = 0
    best_any = 1
    d = 1
    while d * d <= total:
        if total % d == 0:
            for t in (d, total // d):
                if t <= cap:
                    if t > best_any:
                        best_any = t
                    if t % unit == 0 and t > best_aligned:
                        best_aligned = t
        d += 1
    if best_aligned:
        return best_aligned
    if total <= 2 * cap:
        return total
    return best_any


def _stats_kernel(x_ref, stat_ref, sum_sc, m2_sc):
    """Streaming per-row statistics with an in-kernel Chan merge over lane tiles.

    Grid: (row-blocks, lane-blocks); lane-block axis is the innermost
    "arbitrary" reduction axis.

    x_ref:    (R, T)      rows = (sample, channel) pairs, lanes = flat spatial
    stat_ref: (1, R, 2)   [:, :, 0] = sum, [:, :, 1] = centered M2 over all HW
    sum_sc:   (R, 1) VMEM running per-row sum
    m2_sc:    (R, 1) VMEM running per-row centered M2
    """
    t = pl.program_id(1)
    nt = pl.num_programs(1)
    x = x_ref[...].astype(jnp.float32)
    tile = x.shape[1]

    s = jnp.sum(x, axis=1, keepdims=True)              # (R, 1)
    mean_b = s * (1.0 / tile)
    d = x - mean_b
    m2 = jnp.sum(d * d, axis=1, keepdims=True)         # centered within tile

    @pl.when(t == 0)
    def _():
        sum_sc[...] = s
        m2_sc[...] = m2

    @pl.when(t > 0)
    def _():
        # Exact Chan combine of the running stats with this tile's stats
        # (all tiles have exactly `tile` elements: exact-divisor tiling).
        n_a = (t * tile).astype(jnp.float32)
        mean_a = sum_sc[...] * (1.0 / n_a)
        delta = mean_b - mean_a
        coef = n_a * float(tile) / (n_a + float(tile))
        m2_sc[...] = m2_sc[...] + m2 + delta * delta * coef
        sum_sc[...] = sum_sc[...] + s

    @pl.when(t == nt - 1)
    def _():
        # Single tiny writeback per row block (not per lane tile).
        stat_ref[0, :, 0:1] = sum_sc[...]
        stat_ref[0, :, 1:2] = m2_sc[...]


def _norm_kernel(x_ref, a_ref, b_ref, o_ref):
    """y = x * a + b   (normalization + affine folded: 2 VPU ops / element)."""
    x = x_ref[...].astype(jnp.float32)
    o_ref[...] = (x * a_ref[...] + b_ref[...]).astype(o_ref.dtype)


@functools.partial(jax.jit,
                   static_argnames=("num_segments", "lane_cap", "block_elems"))
def dial_bn_forward(x, seg_ids, seg_counts, scale_seg, shift_seg, *,
                    num_segments, lane_cap=_MAX_LANE_TILE,
                    block_elems=_BLOCK_ELEMS):
    """Batch norm per contiguous domain segment over the whole batch.

    x:          (N, C, H, W)
    seg_ids:    (N,)   int32 segment index per sample (contiguous, ascending)
    seg_counts: (S,)   float32 number of samples per segment
    scale_seg:  (S, C) effective per-segment scale (BN weight or shared gamma)
    shift_seg:  (S, C) effective per-segment shift (BN bias or shared beta)
    """
    N, C, H, W = x.shape
    HW = H * W
    NC = N * C
    # (N, C, H, W) -> (N*C, H*W): free reshape, no transpose / extra HBM pass.
    x2 = x.reshape(NC, HW)

    itemsize = jnp.dtype(x.dtype).itemsize
    row_unit = 8 * max(1, 4 // itemsize)            # 8 rows f32 / 16 rows bf16
    T = _pick_tile(HW, 128, lane_cap)
    row_cap = max(row_unit, block_elems // T)
    R = _pick_tile(NC, row_unit, row_cap)
    # v7x megacore: prefer >= 2 blocks along the 'parallel' row axis so both
    # TensorCores get work (on single-TC v5e/v6e this costs one extra step).
    if NC // R < 2 and NC >= 2 * row_unit:
        r2 = _pick_tile(NC, row_unit, NC // 2)
        if r2 < NC and r2 % row_unit == 0:
            R = r2
    NR = NC // R
    NT = HW // T

    # ---------- pass 1: per-row (sum, M2) — one streaming HBM read of x ----------
    stats = pl.pallas_call(
        _stats_kernel,
        out_shape=jax.ShapeDtypeStruct((NR, R, 2), jnp.float32),
        grid_spec=pltpu.PrefetchScalarGridSpec(
            num_scalar_prefetch=0,
            grid=(NR, NT),
            in_specs=[pl.BlockSpec((R, T), lambda r, t: (r, t))],
            out_specs=pl.BlockSpec((1, R, 2), lambda r, t: (r, 0, 0)),
            scratch_shapes=[pltpu.VMEM((R, 1), jnp.float32),
                            pltpu.VMEM((R, 1), jnp.float32)],
        ),
        compiler_params=pltpu.CompilerParams(
            dimension_semantics=("parallel", "arbitrary"),
            vmem_limit_bytes=_VMEM_LIMIT_BYTES),
        cost_estimate=pl.CostEstimate(
            flops=4 * NC * HW, transcendentals=0,
            bytes_accessed=NC * HW * itemsize + NC * 2 * 4),
    )(x2)

    # ---- tiny (N, C)-sized glue (fused by the surrounding jit):
    #      exact Chan combine across samples of a segment, fold affine ----
    row_sum = stats[..., 0].reshape(N, C)
    row_m2 = stats[..., 1].reshape(N, C)
    seg_elems = (seg_counts * float(HW)).reshape(num_segments, 1)        # (S, 1)
    seg_sum = jax.ops.segment_sum(row_sum, seg_ids,
                                  num_segments=num_segments,
                                  indices_are_sorted=True)
    mean_seg = seg_sum / seg_elems                                       # (S, C)
    row_mean = row_sum * (1.0 / float(HW))
    delta = row_mean - mean_seg[seg_ids]                                 # (N, C)
    seg_m2 = jax.ops.segment_sum(row_m2 + float(HW) * delta * delta, seg_ids,
                                 num_segments=num_segments,
                                 indices_are_sorted=True)
    var_seg = seg_m2 / seg_elems                                         # biased
    inv_std = lax.rsqrt(var_seg + EPS)
    a_seg = inv_std * scale_seg                                          # (S, C)
    b_seg = shift_seg - mean_seg * a_seg
    a2 = a_seg[seg_ids].reshape(NC, 1).astype(jnp.float32)               # per row
    b2 = b_seg[seg_ids].reshape(NC, 1).astype(jnp.float32)

    # ---------- pass 2: normalize + affine (one HBM read + one HBM write) ----------
    out2 = pl.pallas_call(
        _norm_kernel,
        out_shape=jax.ShapeDtypeStruct((NC, HW), x.dtype),
        grid_spec=pltpu.PrefetchScalarGridSpec(
            num_scalar_prefetch=0,
            grid=(NR, NT),
            in_specs=[pl.BlockSpec((R, T), lambda r, t: (r, t)),
                      pl.BlockSpec((R, 1), lambda r, t: (r, 0)),
                      pl.BlockSpec((R, 1), lambda r, t: (r, 0))],
            out_specs=pl.BlockSpec((R, T), lambda r, t: (r, t)),
        ),
        compiler_params=pltpu.CompilerParams(
            dimension_semantics=("parallel", "parallel"),
            vmem_limit_bytes=_VMEM_LIMIT_BYTES),
        cost_estimate=pl.CostEstimate(
            flops=2 * NC * HW, transcendentals=0,
            bytes_accessed=2 * NC * HW * itemsize + 2 * NC * 4),
    )(x2, a2, b2)

    return out2.reshape(N, C, H, W)


class Config:
    def __init__(self):
        self.domain_permutation = {0: 0, 1: 1}
        self.transformed_is_domain = False
        self.domain_specific_bn_affine = False  # exercise the gamma/beta path


class DialBase:
    """JAX port of DialBase forward (parameters initialized deterministically)."""

    def __init__(self, config, num_channels, domains_count):
        self.config = config
        self.domains_count = domains_count
        self.num_channels = num_channels
        num_bn = domains_count * (2 if config.transformed_is_domain else 1)
        c = num_channels
        # Deterministic synthetic parameters (the torch subclasses would create
        # BatchNorm2d layers of `num_channels` channels).
        base = jnp.arange(num_bn * c, dtype=jnp.float32).reshape(num_bn, c)
        self.bn_weight = 1.0 + 0.05 * base                           # (num_bn, C)
        self.bn_bias = -0.02 * base                                  # (num_bn, C)
        self.gamma = 1.0 + 0.1 * jnp.arange(c, dtype=jnp.float32)    # shared scale
        self.beta = -0.05 * jnp.arange(c, dtype=jnp.float32)         # shared shift

    # Host-side segmentation mirroring the torch loop (kept for parity; used by
    # the pure-jnp reference).
    def create_domain_ranges(self, x, domains):
        domains = np.asarray(domains)
        if domains.shape[0] == 1:
            return [(x, int(domains.reshape(-1)[0]))]
        results = []
        batch_size = domains.shape[0]
        current_domain_id = int(domains[0, 0])
        current_domain_start = 0
        for i in range(1, batch_size):
            latest_domain = int(domains[i, 0])
            if latest_domain != current_domain_id:
                results.append((x[current_domain_start:i], current_domain_id))
                current_domain_id = latest_domain
                current_domain_start = i
        results.append((x[current_domain_start:batch_size], current_domain_id))
        return results

    # Boundary-only segmentation (same host logic, but no per-segment slices of
    # x, so segment lengths never trigger fresh kernel compiles).
    def _segment_info(self, batch_size, domains):
        domains = np.asarray(domains)
        if domains.shape[0] == 1:
            return (np.zeros(batch_size, np.int32),
                    [int(domains.reshape(-1)[0])],
                    np.array([batch_size], np.int32))
        seg_ids = np.zeros(batch_size, np.int32)
        seg_domains = [int(domains[0, 0])]
        current = int(domains[0, 0])
        s = 0
        for i in range(1, batch_size):
            d = int(domains[i, 0])
            if d != current:
                s += 1
                current = d
                seg_domains.append(d)
            seg_ids[i] = s
        counts = np.bincount(seg_ids, minlength=s + 1).astype(np.int32)
        return seg_ids, seg_domains, counts

    def _mapped_domain(self, domain_id, is_transformed):
        mapped = self.config.domain_permutation[domain_id]
        if is_transformed and self.config.transformed_is_domain:
            mapped += self.domains_count
        return mapped

    def forward(self, x, domains, is_transformed, **tile_overrides):
        # TODO(synk): only training-mode BN (batch statistics) is modeled; the
        # eval-mode running-mean/var buffers and their momentum updates of
        # nn.BatchNorm2d are not implemented.
        N, C, H, W = x.shape
        seg_ids_np, seg_domains, counts_np = self._segment_info(N, domains)
        num_segments = len(seg_domains)
        if self.config.domain_specific_bn_affine:
            mapped = jnp.asarray(
                [self._mapped_domain(d, is_transformed) for d in seg_domains],
                dtype=jnp.int32)
            scale_seg = self.bn_weight[mapped]                       # (S, C)
            shift_seg = self.bn_bias[mapped]
        else:
            # BN has no affine (weight=1, bias=0); shared gamma/beta applied:
            # (x_hat * 1 + 0) * gamma + beta == x_hat * gamma + beta
            scale_seg = jnp.broadcast_to(self.gamma[None, :], (num_segments, C))
            shift_seg = jnp.broadcast_to(self.beta[None, :], (num_segments, C))
        return dial_bn_forward(
            x,
            jnp.asarray(seg_ids_np, dtype=jnp.int32),
            jnp.asarray(counts_np, dtype=jnp.float32),
            scale_seg,
            shift_seg,
            num_segments=num_segments,
            **tile_overrides,
        )


def _reference_forward(model, x, domains, is_transformed):
    """Pure-jnp reference (two-pass mean/var per segment) for correctness."""
    outs = []
    for seg, dom in model.create_domain_ranges(x, domains):
        mapped = model._mapped_domain(dom, is_transformed)
        xf = seg.astype(jnp.float32)
        mean = jnp.mean(xf, axis=(0, 2, 3), keepdims=True)
        var = jnp.mean((xf - mean) ** 2, axis=(0, 2, 3), keepdims=True)
        x_hat = (xf - mean) / jnp.sqrt(var + EPS)
        if model.config.domain_specific_bn_affine:
            s = model.bn_weight[mapped].reshape(1, -1, 1, 1)
            b = model.bn_bias[mapped].reshape(1, -1, 1, 1)
        else:
            s = model.gamma.reshape(1, -1, 1, 1)
            b = model.beta.reshape(1, -1, 1, 1)
        outs.append(x_hat * s + b)
    return jnp.concatenate(outs, axis=0)


if __name__ == "__main__":
    key = jax.random.PRNGKey(0)
    B, C, H, W = 4, 4, 16, 16
    x = jax.random.normal(key, (B, C, H, W), dtype=jnp.float32)
    # contiguous domain labels, shape (B, 1) as required by the module
    domains = np.array([[0], [0], [1], [1]], dtype=np.int32)
    is_transformed = False

    # shared gamma/beta path (domain_specific_bn_affine = False)
    config = Config()
    model = DialBase(config, num_channels=C, domains_count=2)
    out = jax.block_until_ready(model.forward(x, domains, is_transformed))
    assert out.shape == (B, C, H, W)
    ref = _reference_forward(model, x, domains, is_transformed)
    np.testing.assert_allclose(np.asarray(out), np.asarray(ref),
                               atol=1e-4, rtol=1e-4)

    # domain-specific affine path
    config2 = Config()
    config2.domain_specific_bn_affine = True
    model2 = DialBase(config2, num_channels=C, domains_count=2)
    out2 = jax.block_until_ready(model2.forward(x, domains, is_transformed))
    ref2 = _reference_forward(model2, x, domains, is_transformed)
    np.testing.assert_allclose(np.asarray(out2), np.asarray(ref2),
                               atol=1e-4, rtol=1e-4)

    # small-tile run that forces multiple lane tiles and exercises the
    # in-kernel Chan merge path of the stats kernel
    out3 = jax.block_until_ready(
        model.forward(x, domains, is_transformed, lane_cap=128, block_elems=1024))
    np.testing.assert_allclose(np.asarray(out3), np.asarray(ref),
                               atol=1e-4, rtol=1e-4)

    print("KERNEL_OK")
</pallas_src>

<mosaic_0001>
module attributes {stable_mosaic.version = 11 : i64} {
  func.func @_stats_kernel(%arg0: i32, %arg1: i32, %arg2: memref<8x256xf32, #tpu.memory_space<vmem>>, %arg3: memref<1x8x2xf32, #tpu.memory_space<vmem>>, %arg4: memref<8x1xf32, #tpu.memory_space<vmem>>, %arg5: memref<8x1xf32, #tpu.memory_space<vmem>>) attributes {dimension_semantics = [#tpu.dimension_semantics<parallel>, #tpu.dimension_semantics<arbitrary>], iteration_bounds = array<i64: 2, 1>, scalar_prefetch = 0 : i64, scratch_operands = 2 : i64, tpu.core_type = #tpu.core_type<tc>, window_params = [{transform_indices = @transform_0, window_bounds = array<i64: 8, 256>}, {transform_indices = @transform_1, window_bounds = array<i64: 1, 8, 2>}]} {
    %c0 = arith.constant 0 : index
    %c0_0 = arith.constant 0 : index
    %0 = vector.load %arg2[%c0, %c0_0] : memref<8x256xf32, #tpu.memory_space<vmem>>, vector<8x256xf32>
    %cst = arith.constant dense<0.000000e+00> : vector<8xf32>
    %1 = vector.multi_reduction <add>, %0, %cst [1] : vector<8x256xf32> to vector<8xf32>
    %2 = vector.shape_cast %1 : vector<8xf32> to vector<8x1xf32>
    %cst_1 = arith.constant 3.906250e-03 : f32
    %3 = vector.broadcast %cst_1 : f32 to vector<8x1xf32>
    %4 = arith.mulf %2, %3 : vector<8x1xf32>
    %5 = vector.broadcast %4 : vector<8x1xf32> to vector<8x256xf32>
    %6 = arith.subf %0, %5 : vector<8x256xf32>
    %7 = arith.mulf %6, %6 : vector<8x256xf32>
    %cst_2 = arith.constant dense<0.000000e+00> : vector<8xf32>
    %8 = vector.multi_reduction <add>, %7, %cst_2 [1] : vector<8x256xf32> to vector<8xf32>
    %9 = vector.shape_cast %8 : vector<8xf32> to vector<8x1xf32>
    %c0_i32 = arith.constant 0 : i32
    %10 = arith.cmpi eq, %arg1, %c0_i32 : i32
    %11 = arith.extui %10 : i1 to i32
    %c0_i32_3 = arith.constant 0 : i32
    %12 = arith.cmpi ne, %11, %c0_i32_3 : i32
    scf.if %12 {
      %c0_8 = arith.constant 0 : index
      %c0_9 = arith.constant 0 : index
      %19 = vector.load %arg4[%c0_8, %c0_9] : memref<8x1xf32, #tpu.memory_space<vmem>>, vector<8x1xf32>
      tpu.vector_store %arg4[%c0_8, %c0_9], %2 {strides = array<i32>} : memref<8x1xf32, #tpu.memory_space<vmem>>, vector<8x1xf32>,
      %c0_10 = arith.constant 0 : index
      %c0_11 = arith.constant 0 : index
      %20 = vector.load %arg5[%c0_10, %c0_11] : memref<8x1xf32, #tpu.memory_space<vmem>>, vector<8x1xf32>
      tpu.vector_store %arg5[%c0_10, %c0_11], %9 {strides = array<i32>} : memref<8x1xf32, #tpu.memory_space<vmem>>, vector<8x1xf32>,
    } else {
    }
    %c0_i32_4 = arith.constant 0 : i32
    %13 = arith.cmpi sgt, %arg1, %c0_i32_4 : i32
    %14 = arith.extui %13 : i1 to i32
    %c0_i32_5 = arith.constant 0 : i32
    %15 = arith.cmpi ne, %14, %c0_i32_5 : i32
    scf.if %15 {
      %c256_i32 = arith.constant 256 : i32
      %19 = arith.muli %arg1, %c256_i32 : i32
      %20 = arith.sitofp %19 : i32 to f32
      %c0_8 = arith.constant 0 : index
      %c0_9 = arith.constant 0 : index
      %21 = vector.load %arg4[%c0_8, %c0_9] : memref<8x1xf32, #tpu.memory_space<vmem>>, vector<8x1xf32>
      %cst_10 = arith.constant 1.000000e+00 : f32
      %22 = arith.divf %cst_10, %20 : f32
      %23 = vector.broadcast %22 : f32 to vector<8x1xf32>
      %24 = arith.mulf %21, %23 : vector<8x1xf32>
      %25 = arith.subf %4, %24 : vector<8x1xf32>
      %cst_11 = arith.constant 2.560000e+02 : f32
      %26 = arith.mulf %20, %cst_11 : f32
      %cst_12 = arith.constant 2.560000e+02 : f32
      %27 = arith.addf %20, %cst_12 : f32
      %28 = arith.divf %26, %27 : f32
      %c0_13 = arith.constant 0 : index
      %c0_14 = arith.constant 0 : index
      %29 = vector.load %arg5[%c0_13, %c0_14] : memref<8x1xf32, #tpu.memory_space<vmem>>, vector<8x1xf32>
      %30 = arith.addf %29, %9 : vector<8x1xf32>
      %31 = arith.mulf %25, %25 : vector<8x1xf32>
      %32 = vector.broadcast %28 : f32 to vector<8x1xf32>
      %33 = arith.mulf %31, %32 : vector<8x1xf32>
      %34 = arith.addf %30, %33 : vector<8x1xf32>
      %c0_15 = arith.constant 0 : index
      %c0_16 = arith.constant 0 : index
      %35 = vector.load %arg5[%c0_15, %c0_16] : memref<8x1xf32, #tpu.memory_space<vmem>>, vector<8x1xf32>
      tpu.vector_store %arg5[%c0_15, %c0_16], %34 {strides = array<i32>} : memref<8x1xf32, #tpu.memory_space<vmem>>, vector<8x1xf32>,
      %c0_17 = arith.constant 0 : index
      %c0_18 = arith.constant 0 : index
      %36 = vector.load %arg4[%c0_17, %c0_18] : memref<8x1xf32, #tpu.memory_space<vmem>>, vector<8x1xf32>
      %37 = arith.addf %36, %2 : vector<8x1xf32>
      %c0_19 = arith.constant 0 : index
      %c0_20 = arith.constant 0 : index
      %38 = vector.load %arg4[%c0_19, %c0_20] : memref<8x1xf32, #tpu.memory_space<vmem>>, vector<8x1xf32>
      tpu.vector_store %arg4[%c0_19, %c0_20], %37 {strides = array<i32>} : memref<8x1xf32, #tpu.memory_space<vmem>>, vector<8x1xf32>,
    } else {
    }
    %c0_i32_6 = arith.constant 0 : i32
    %16 = arith.cmpi eq, %arg1, %c0_i32_6 : i32
    %17 = arith.extui %16 : i1 to i32
    %c0_i32_7 = arith.constant 0 : i32
    %18 = arith.cmpi ne, %17, %c0_i32_7 : i32
    scf.if %18 {
      %c0_8 = arith.constant 0 : index
      %c0_9 = arith.constant 0 : index
      %19 = vector.load %arg4[%c0_8, %c0_9] : memref<8x1xf32, #tpu.memory_space<vmem>>, vector<8x1xf32>
      %c0_10 = arith.constant 0 : index
      %c0_11 = arith.constant 0 : index
      %c0_12 = arith.constant 0 : index
      %20 = vector.load %arg3[%c0_10, %c0_11, %c0_12] : memref<1x8x2xf32, #tpu.memory_space<vmem>>, vector<1x8x1xf32>
      %21 = vector.shape_cast %20 : vector<1x8x1xf32> to vector<8x1xf32>
      %22 = vector.shape_cast %19 : vector<8x1xf32> to vector<1x8x1xf32>
      tpu.vector_store %arg3[%c0_10, %c0_11, %c0_12], %22 {strides = array<i32>} : memref<1x8x2xf32, #tpu.memory_space<vmem>>, vector<1x8x1xf32>,
      %c0_13 = arith.constant 0 : index
      %c0_14 = arith.constant 0 : index
      %23 = vector.load %arg5[%c0_13, %c0_14] : memref<8x1xf32, #tpu.memory_space<vmem>>, vector<8x1xf32>
      %c0_15 = arith.constant 0 : index
      %c0_16 = arith.constant 0 : index
      %c1 = arith.constant 1 : index
      %24 = vector.load %arg3[%c0_15, %c0_16, %c1] : memref<1x8x2xf32, #tpu.memory_space<vmem>>, vector<1x8x1xf32>
      %25 = vector.shape_cast %24 : vector<1x8x1xf32> to vector<8x1xf32>
      %26 = vector.shape_cast %23 : vector<8x1xf32> to vector<1x8x1xf32>
      tpu.vector_store %arg3[%c0_15, %c0_16, %c1], %26 {strides = array<i32>} : memref<1x8x2xf32, #tpu.memory_space<vmem>>, vector<1x8x1xf32>,
    } else {
    }
    return
  }
  func.func @transform_0(%arg0: i32, %arg1: i32) -> (i32, i32) {
    %c0_i32 = arith.constant 0 : i32
    return %arg0, %arg1 : i32, i32
  }
  func.func @transform_1(%arg0: i32, %arg1: i32) -> (i32, i32, i32) {
    %c0_i32 = arith.constant 0 : i32
    %c0_i32_0 = arith.constant 0 : i32
    %c0_i32_1 = arith.constant 0 : i32
    return %arg0, %c0_i32, %c0_i32_0 : i32, i32, i32
  }
}

module attributes {stable_mosaic.version = 11 : i64} {
  func.func @_norm_kernel(%arg0: i32, %arg1: i32, %arg2: memref<8x256xf32, #tpu.memory_space<vmem>>, %arg3: memref<8x1xf32, #tpu.memory_space<vmem>>, %arg4: memref<8x1xf32, #tpu.memory_space<vmem>>, %arg5: memref<8x256xf32, #tpu.memory_space<vmem>>) attributes {dimension_semantics = [#tpu.dimension_semantics<parallel>, #tpu.dimension_semantics<parallel>], iteration_bounds = array<i64: 2, 1>, scalar_prefetch = 0 : i64, scratch_operands = 0 : i64, tpu.core_type = #tpu.core_type<tc>, window_params = [{transform_indices = @transform_0, window_bounds = array<i64: 8, 256>}, {transform_indices = @transform_1, window_bounds = array<i64: 8, 1>}, {transform_indices = @transform_2, window_bounds = array<i64: 8, 1>}, {transform_indices = @transform_3, window_bounds = array<i64: 8, 256>}]} {
    %c0 = arith.constant 0 : index
    %c0_0 = arith.constant 0 : index
    %0 = vector.load %arg2[%c0, %c0_0] : memref<8x256xf32, #tpu.memory_space<vmem>>, vector<8x256xf32>
    %c0_1 = arith.constant 0 : index
    %c0_2 = arith.constant 0 : index
    %1 = vector.load %arg3[%c0_1, %c0_2] : memref<8x1xf32, #tpu.memory_space<vmem>>, vector<8x1xf32>
    %2 = vector.broadcast %1 : vector<8x1xf32> to vector<8x256xf32>
    %3 = arith.mulf %0, %2 : vector<8x256xf32>
    %c0_3 = arith.constant 0 : index
    %c0_4 = arith.constant 0 : index
    %4 = vector.load %arg4[%c0_3, %c0_4] : memref<8x1xf32, #tpu.memory_space<vmem>>, vector<8x1xf32>
    %5 = vector.broadcast %4 : vector<8x1xf32> to vector<8x256xf32>
    %6 = arith.addf %3, %5 : vector<8x256xf32>
    %c0_5 = arith.constant 0 : index
    %c0_6 = arith.constant 0 : index
    %7 = vector.load %arg5[%c0_5, %c0_6] : memref<8x256xf32, #tpu.memory_space<vmem>>, vector<8x256xf32>
    tpu.vector_store %arg5[%c0_5, %c0_6], %6 {strides = array<i32>} : memref<8x256xf32, #tpu.memory_space<vmem>>, vector<8x256xf32>,
    return
  }
  func.func @transform_0(%arg0: i32, %arg1: i32) -> (i32, i32) {
    %c0_i32 = arith.constant 0 : i32
    return %arg0, %arg1 : i32, i32
  }
  func.func @transform_1(%arg0: i32, %arg1: i32) -> (i32, i32) {
    %c0_i32 = arith.constant 0 : i32
    %c0_i32_0 = arith.constant 0 : i32
    return %arg0, %c0_i32 : i32, i32
  }
  func.func @transform_2(%arg0: i32, %arg1: i32) -> (i32, i32) {
    %c0_i32 = arith.constant 0 : i32
    %c0_i32_0 = arith.constant 0 : i32
    return %arg0, %c0_i32 : i32, i32
  }
  func.func @transform_3(%arg0: i32, %arg1: i32) -> (i32, i32) {
    %c0_i32 = arith.constant 0 : i32
    return %arg0, %arg1 : i32, i32
  }
}

</mosaic_0001>

<bundles_post_ra>
// kernel: dial_bn_forward.3
= control target key start
LH: loop header
LB: loop body
LE: loop exit
PB: predicated region body
PF: predicated region fallthrough
CT: control target
= control target key end

     0   :  { %s461_s12 = smov 0   ;;  %s463_s13 = smov 0   ;;  %s500_s0 = inlined_call_operand.vmem [shape: f32[16,256], index: 0, kind: input, shape index: {}]   ;;  %s501_s1 = inlined_call_operand.vmem [shape: f32[16,1], index: 1, kind: input, shape index: {}]   ;;  %s502_s2 = inlined_call_operand.vmem [shape: f32[16,1], index: 2, kind: input, shape index: {}]   ;;  %s503_s3 = inlined_call_operand.vmem [shape: f32[16,256], index: 3, kind: output, shape index: {}]  }
   0x1   :  { %s465_s14 = smov 0  }
   0x2 LB: > { %s25_s15 = sadd.s32 1, %s434_s13  ;;  %p379_p0 = scmp.ge.s32.totalorder %s438_s14, 1  ;;  %s438_s14 = sphi %s465_s14, %s13_s14   ;;  %s434_s13 = sphi %s463_s13, %s505_s13   ;;  %s430_s12 = sphi %s461_s12, %s504_s12  }
   0x3   : > { %p27_p1 = scmp.ge.s32.totalorder %s25_s15, 2  ;;  %p176_p2 = scmp.lt.s32.totalorder %s438_s14, 3 }
   0x5   : > { %s507_s15 = smov (%p27_p1, %s25_s15), 0  ;;  %p177_p3 = pnand %p379_p0, %p176_p2 }
   0x6   : > { %p217_p4 = scmp.lt.s32.totalorder (!%p177_p3), %s430_s12, 1 }
   0x7   : > { %180 = sbr.rel (%p177_p3) target bundleno = 143 (0x8f), region = 32 }
   0xc   : > { %v440_v0 = vmov 0   ;;  %s509_s12 = smov (!%p217_p4, %s430_s12), 1 }
   0xd   : > { %415 = vset.pattern.permute.xlu0 %v440_v0  ;;  %s382_s16 = sshll.u32 %s509_s12, 3  ;;  %s388_s23 = sshll.u32 %s509_s12, 4 }
   0xe   : > { %s229_s19 = scalar_lea.vmem %s501_s1, %s382_s16  ;;  %s233_s22 = scalar_lea.vmem %s502_s2, %s382_s16 }
   0xf   : > { %v246_v1 = vld [vmem:[%s229_s19] sm:$0xff]  ;;  %s224_s26 = scalar_lea.vmem %s500_s0, %s388_s23  ;;  %s242_s29 = scalar_lea.vmem %s503_s3, %s388_s23 }
  0x10   : > { %249 = vperm.xlu0 %415, %v246_v1   ;;  %v254_v2 = vld [vmem:[%s233_s22] sm:$0xff]  ;;  %v245_v5 = vld [vmem:[%s224_s26 + $0x8] sm:$0xff] }
  0x11   : > { %v244_v4 = vld [vmem:[%s224_s26] sm:$0xff] }
  0x18   : > { %257 = vperm.xlu0 %415, %v254_v2  }
  0x82   : > { %v250_v3 = vpop.permute.xlu0 %249 }
  0x83   : > { %v252_v6 = vmul.f32 %v250_v3, %v244_v4  ;;  %v253_v7 = vmul.f32 %v250_v3, %v245_v5 }
  0x8a   : > { %v258_v8 = vpop.permute.xlu0 %257 }
  0x8b   : > { %v260_v9 = vadd.f32 %v258_v8, %v252_v6  ;;  %v261_v10 = vadd.f32 %v258_v8, %v253_v7 }
  0x8d   : > { %262 = vst [vmem:[%s242_s29] sm:$0xff] %v260_v9 }
  0x8e   : > { %263 = vst [vmem:[%s242_s29 + $0x8] sm:$0xff] %v261_v10 }
  0x8f PF: > { %s13_s14 = sadd.s32 1, %s438_s14   ;;  %s504_s12 = smov %s434_s13 }
  0x90   : > { %p10_p5 = scmp.ge.s32.totalorder %s13_s14, 4   ;;  %s505_s13 = smov %s507_s15 }
  0x92   :  { %12 = sbr.rel (!%p10_p5) target bundleno = 2 (0x2), region = 68 }

// kernel: dial_bn_forward.2
= control target key start
LH: loop header
LB: loop body
LE: loop exit
PB: predicated region body
PF: predicated region fallthrough
CT: control target
= control target key end

     0   :  { %s370_s6 = smov 0   ;;  %s372_s7 = smov 0   ;;  %s403_s0 = inlined_call_operand.vmem [shape: f32[16,256], index: 0, kind: input, shape index: {}]   ;;  %s404_s1 = inlined_call_operand.vmem [shape: f32[2,8,2], index: 1, kind: output, shape index: {}]  }
   0x1   :  { %s374_s8 = smov 0  }
   0x2 LB: > { %s23_s9 = sadd.s32 1, %s353_s7  ;;  %p303_p0 = scmp.ge.s32.totalorder %s357_s8, 1  ;;  %s357_s8 = sphi %s374_s8, %s11_s8   ;;  %s353_s7 = sphi %s372_s7, %s406_s7   ;;  %s349_s6 = sphi %s370_s6, %s405_s6  }
   0x3   : > { %p25_p1 = scmp.ge.s32.totalorder %s23_s9, 2  ;;  %p106_p2 = scmp.lt.s32.totalorder %s357_s8, 3 }
   0x5   : > { %s408_s9 = smov (%p25_p1, %s23_s9), 0  ;;  %p107_p3 = pnand %p303_p0, %p106_p2 }
   0x6   : > { %p130_p4 = scmp.lt.s32.totalorder (!%p107_p3), %s349_s6, 1  ;;  %s359_s18 = smov (!%p107_p3), 1  }
   0x7   : > { %110 = sbr.rel (%p107_p3) target bundleno = 382 (0x17e), region = 24 }
   0xc   : > { %s410_s6 = smov (!%p130_p4, %s349_s6), 1  ;;  %vm160_vm0 = vcmask 7168   ;;  %vm230_vm1 = vcmask 15368  }
   0xd   : > { %s309_s10 = sshll.u32 %s410_s6, 4  ;;  %s306_s14 = sshll.u32 %s410_s6, 3 }
   0xe   : > { %s137_s13 = scalar_lea.vmem %s403_s0, %s309_s10  ;;  %s142_s17 = scalar_lea.vmem %s404_s1, %s306_s14 }
   0xf   : > { %v143_v0 = vld [vmem:[%s137_s13] sm:$0xff]  ;;  %v144_v1 = vld [vmem:[%s137_s13 + $0x8] sm:$0xff] }
  0x10   : > { %v145_v2 = vadd.f32 %v144_v1, %v143_v0 }
  0x12   : > { %146 = vadd.xlane.f32.xlu0 %v145_v2 }
  0x85   : > { %v147_v3 = vpop.xlane.xlu0 %146 }
  0x86   : > { %v148_v4 = vmul.f32 0.00390625, %v147_v3  ;;  %161 = vst.msk [vmem:[#allocation2] sm:$0xff] %vm160_vm0, %v147_v3 }
  0x88   : > { %v149_v5 = vsub.f32 %v143_v0, %v148_v4  ;;  %v150_v6 = vsub.f32 %v144_v1, %v148_v4 }
  0x8a   : > { %v151_v7 = vmul.f32 %v149_v5, %v149_v5  ;;  %v152_v8 = vmul.f32 %v150_v6, %v150_v6 }
  0x8c   : > { %v153_v9 = vadd.f32 %v152_v8, %v151_v7 }
  0x8d   : > { %v222_v10 = vld [vmem:[#allocation2] sm:$0xff] }
  0x8e   : > { %224 = vst.msk [vmem:[%s142_s17] sm:$0xff] %vm160_vm0, %v222_v10  ;;  %154 = vadd.xlane.f32.xlu0 %v153_v9 }
 0x101   : > { %v155_v11 = vpop.xlane.xlu0 %154 }
 0x102   : > { %162 = vst.msk [vmem:[#allocation3] sm:$0xff] %vm160_vm0, %v155_v11 }
 0x109   : > { %v225_v12 = vld [vmem:[#allocation3] sm:$0xff] }
 0x10a   : > { %227 = vrot.lane.b32.xlu1 %v225_v12, %s359_s18 }
 0x17c   : > { %v228_v13 = vpop.permute.xlu1 %227 }
 0x17d   : > { %231 = vst.msk [vmem:[%s142_s17] sm:$0xff] %vm230_vm1, %v228_v13 }
 0x17e PF: > { %s11_s8 = sadd.s32 1, %s357_s8   ;;  %s405_s6 = smov %s353_s7 }
 0x17f   : > { %p8_p5 = scmp.ge.s32.totalorder %s11_s8, 4   ;;  %s406_s7 = smov %s408_s9 }
 0x181   :  { %10 = sbr.rel (!%p8_p5) target bundleno = 2 (0x2), region = 66 }

</bundles_post_ra>
